<compile_context>
chip_gen: v7x
topology: tpu7x:2x2x1
jax: 0.10.0
libtpu: 0.0.40
codegen_flags: <defaults>
</compile_context>

<pallas_src>
import functools
import math

import jax
import jax.numpy as jnp
from jax import lax
from jax.experimental import pallas as pl
from jax.experimental.pallas import tpu as pltpu


def bert_attention_kernel(h_ref, mask_ref,
                          wq_ref, bq_ref, wk_ref, bk_ref, wv_ref, bv_ref,
                          wo_ref, bo_ref, gamma_ref, beta_ref,
                          o_ref,
                          q_scr, k_scr, v_scr, ctx_scr, ctx_flat_scr,
                          *, num_heads, head_size, ln_eps):
    x_in = h_ref[0]                                   # (S, H) in input dtype
    x_bf = x_in.astype(jnp.bfloat16)                  # MXU operand
    mask = mask_ref[0].astype(jnp.float32)            # (1, S) additive key mask

    def linear(w_ref, b_ref):
        # x @ W^T + b with W in PyTorch (out, in) layout; bf16 operands on the MXU,
        # f32 accumulation via preferred_element_type.
        acc = lax.dot_general(x_bf, w_ref[...],
                              dimension_numbers=(((1,), (1,)), ((), ())),
                              preferred_element_type=jnp.float32)
        return acc + b_ref[...].astype(jnp.float32)

    inv_sqrt_d = 1.0 / math.sqrt(head_size)
    q = linear(wq_ref, bq_ref) * inv_sqrt_d           # fold 1/sqrt(d) into Q
    k = linear(wk_ref, bk_ref)
    v = linear(wv_ref, bv_ref)

    # One up-front relayout into head-major (nh, S, hd) bf16 slabs (static lane slices,
    # outside the compute loop) so the head loop indexes only the leading axis.
    for h in range(num_heads):
        sl = slice(h * head_size, (h + 1) * head_size)
        q_scr[h] = q[:, sl].astype(jnp.bfloat16)
        k_scr[h] = k[:, sl].astype(jnp.bfloat16)
        v_scr[h] = v[:, sl].astype(jnp.bfloat16)

    def head_body(h, carry):
        qh = q_scr[h]                                 # (S, hd) bf16
        kh = k_scr[h]
        vh = v_scr[h]
        scores = lax.dot_general(qh, kh,              # Q K^T -> (S, S), f32 acc
                                 dimension_numbers=(((1,), (1,)), ((), ())),
                                 preferred_element_type=jnp.float32)
        scores = scores + mask
        m = jnp.max(scores, axis=-1, keepdims=True)
        p = jnp.exp(scores - m)                       # unnormalized probs
        denom = jnp.sum(p, axis=-1, keepdims=True)
        # TODO(synk): attention_probs dropout omitted (eval / inference mode).
        ctx = jnp.dot(p.astype(jnp.bfloat16), vh,     # (S, hd), bf16 operands / f32 acc
                      preferred_element_type=jnp.float32)
        ctx = ctx * pl.reciprocal(denom, approx=True)  # normalize after PV (EUP slot)
        ctx_scr[h] = ctx.astype(jnp.bfloat16)
        return carry

    lax.fori_loop(0, num_heads, head_body, 0)

    # Gather heads into a lane-dense (S, H) slab, then a single full-K output projection.
    for h in range(num_heads):
        ctx_flat_scr[:, h * head_size:(h + 1) * head_size] = ctx_scr[h]

    out = lax.dot_general(ctx_flat_scr[...], wo_ref[...],
                          dimension_numbers=(((1,), (1,)), ((), ())),
                          preferred_element_type=jnp.float32)
    out = out + bo_ref[...].astype(jnp.float32)
    # TODO(synk): hidden-state dropout omitted (eval / inference mode).
    y = out + x_in.astype(jnp.float32)                # residual
    mu = jnp.mean(y, axis=-1, keepdims=True)
    var = jnp.mean((y - mu) ** 2, axis=-1, keepdims=True)
    y_norm = (y - mu) * lax.rsqrt(var + ln_eps)       # TF-style LN: eps inside sqrt
    o_ref[0] = (gamma_ref[...].astype(jnp.float32) * y_norm
                + beta_ref[...].astype(jnp.float32)).astype(o_ref.dtype)


def _scoped_vmem_limit_bytes():
    # Re-derive the scoped-VMEM budget per chip (v5e/v6e: 128 MiB physical, v7x: 64 MiB
    # per TensorCore); leave ~25% headroom for compiler-internal scratch.
    try:
        cap = int(pltpu.get_tpu_info().vmem_capacity_bytes)
    except Exception:
        cap = 0
    if cap <= 0:
        cap = 64 * 1024 * 1024      # conservative fallback (v7x per-TC size)
    return max(32 * 1024 * 1024, min(cap * 3 // 4, 100 * 1024 * 1024))


def bert_attention(hidden_states, attention_mask,
                   wq, bq, wk, bk, wv, bv, wo, bo, gamma, beta,
                   *, num_heads, ln_eps=1e-12):
    """hidden_states: (B, S, H); attention_mask: (B, 1, 1, S) additive mask (broadcast
    over queries); w*: (H, H) PyTorch (out, in) layout; b*/gamma/beta: (H,)."""
    B, S, H = hidden_states.shape
    assert H % num_heads == 0
    head_size = H // num_heads
    # Only the standard broadcastable extended mask is supported; a per-query
    # (B, 1, S, S) mask would be silently mishandled by the reshape below.
    assert attention_mask.shape == (B, 1, 1, S), attention_mask.shape

    mask = attention_mask.reshape(B, 1, S).astype(jnp.float32)
    # Weights feed the MXU as bf16 (halves resident VMEM + the one-time weight DMA);
    # f32 accumulation is requested in-kernel. Biases / LayerNorm params stay f32.
    w_bf = lambda w: w.astype(jnp.bfloat16)
    b2 = lambda t: t.reshape(1, H).astype(jnp.float32)

    kernel = functools.partial(bert_attention_kernel,
                               num_heads=num_heads,
                               head_size=head_size,
                               ln_eps=ln_eps)

    act_spec = pl.BlockSpec((1, S, H), lambda b: (b, 0, 0))      # streamed per batch row
    mask_spec = pl.BlockSpec((1, 1, S), lambda b: (b, 0, 0))
    resident = pl.Buffered(1)                                    # constant block: no double-buffer
    w_spec = pl.BlockSpec((H, H), lambda b: (0, 0), pipeline_mode=resident)
    vec_spec = pl.BlockSpec((1, H), lambda b: (0, 0), pipeline_mode=resident)

    # Advisory cost estimate so XLA schedules neighbouring ops around the custom call.
    flops = 2 * B * 4 * S * H * H + 2 * B * num_heads * 2 * S * S * head_size
    transcendentals = B * num_heads * S * S + 2 * B * S
    bytes_accessed = (4 * H * H * 2 + 8 * H * 4
                      + 2 * B * S * H * hidden_states.dtype.itemsize
                      + B * S * 4)

    # TODO(synk): for v7x (2 TCs/chip) add a second parallel grid axis (query tiles /
    # head groups) when B is small or odd; batch-only parallelism suffices on 1-TC chips.
    return pl.pallas_call(
        kernel,
        out_shape=jax.ShapeDtypeStruct((B, S, H), hidden_states.dtype),
        grid=(B,),
        in_specs=[act_spec, mask_spec,
                  w_spec, vec_spec,     # query
                  w_spec, vec_spec,     # key
                  w_spec, vec_spec,     # value
                  w_spec, vec_spec,     # output dense
                  vec_spec, vec_spec],  # gamma, beta
        out_specs=pl.BlockSpec((1, S, H), lambda b: (b, 0, 0)),
        scratch_shapes=[
            pltpu.VMEM((num_heads, S, head_size), jnp.bfloat16),   # Q head-major slab
            pltpu.VMEM((num_heads, S, head_size), jnp.bfloat16),   # K head-major slab
            pltpu.VMEM((num_heads, S, head_size), jnp.bfloat16),   # V head-major slab
            pltpu.VMEM((num_heads, S, head_size), jnp.bfloat16),   # per-head context
            pltpu.VMEM((S, H), jnp.bfloat16),                      # lane-dense context
        ],
        cost_estimate=pl.CostEstimate(flops=flops,
                                      transcendentals=transcendentals,
                                      bytes_accessed=bytes_accessed),
        compiler_params=pltpu.CompilerParams(
            dimension_semantics=("parallel",),
            vmem_limit_bytes=_scoped_vmem_limit_bytes()),
    )(hidden_states, mask,
      w_bf(wq), b2(bq), w_bf(wk), b2(bk), w_bf(wv), b2(bv),
      w_bf(wo), b2(bo), b2(gamma), b2(beta))


def _reference(h, ext_mask, wq, bq, wk, bk, wv, bv, wo, bo, gamma, beta,
               num_heads, eps=1e-12):
    B, S, H = h.shape
    hd = H // num_heads
    lin = lambda x, w, b: x @ w.T + b
    split = lambda x: x.reshape(B, S, num_heads, hd).transpose(0, 2, 1, 3)
    q, k, v = split(lin(h, wq, bq)), split(lin(h, wk, bk)), split(lin(h, wv, bv))
    scores = jnp.einsum('bhqd,bhkd->bhqk', q, k) / math.sqrt(hd) + ext_mask
    probs = jax.nn.softmax(scores, axis=-1)
    ctx = jnp.einsum('bhqk,bhkd->bhqd', probs, v).transpose(0, 2, 1, 3).reshape(B, S, H)
    y = lin(ctx, wo, bo) + h
    mu = y.mean(-1, keepdims=True)
    var = ((y - mu) ** 2).mean(-1, keepdims=True)
    return gamma * ((y - mu) / jnp.sqrt(var + eps)) + beta


if __name__ == "__main__":
    # Small config consistent with the module: batch=2, seq=8, hidden=32, heads=4.
    B, S, H, NH = 2, 8, 32, 4

    key = jax.random.PRNGKey(0)
    keys = jax.random.split(key, 12)

    hidden_states = jax.random.normal(keys[0], (B, S, H), dtype=jnp.float32)

    # Standard BERT extended attention mask: (B, 1, 1, S), 0 for valid, -10000 for pad.
    valid = jnp.ones((B, S), dtype=jnp.float32).at[1, 5:].set(0.0)
    attention_mask = ((1.0 - valid) * -10000.0).reshape(B, 1, 1, S)

    bound = 1.0 / math.sqrt(H)
    uni = lambda kk, shape: jax.random.uniform(kk, shape, dtype=jnp.float32,
                                               minval=-bound, maxval=bound)
    wq, bq = uni(keys[1], (H, H)), uni(keys[2], (H,))
    wk, bk = uni(keys[3], (H, H)), uni(keys[4], (H,))
    wv, bv = uni(keys[5], (H, H)), uni(keys[6], (H,))
    wo, bo = uni(keys[7], (H, H)), uni(keys[8], (H,))
    gamma = 1.0 + 0.1 * jax.random.normal(keys[9], (H,), dtype=jnp.float32)
    beta = 0.1 * jax.random.normal(keys[10], (H,), dtype=jnp.float32)

    out = bert_attention(hidden_states, attention_mask,
                         wq, bq, wk, bk, wv, bv, wo, bo, gamma, beta,
                         num_heads=NH)
    out = jax.block_until_ready(out)

    with jax.default_matmul_precision("highest"):
        ref = _reference(hidden_states, attention_mask,
                         wq, bq, wk, bk, wv, bv, wo, bo, gamma, beta, NH)

    assert out.shape == (B, S, H)
    # bf16 MXU operands (f32 accumulation): tolerance loosened vs the f32 reference.
    assert jnp.allclose(out, ref, atol=3e-2, rtol=3e-2), float(jnp.max(jnp.abs(out - ref)))

    print("KERNEL_OK")
</pallas_src>

<mosaic_0001>
module attributes {stable_mosaic.version = 11 : i64} {
  func.func @bert_attention_kernel(%arg0: i32, %arg1: memref<1x8x32xf32, #tpu.memory_space<vmem>>, %arg2: memref<1x1x8xf32, #tpu.memory_space<vmem>>, %arg3: memref<32x32xbf16, #tpu.memory_space<vmem>>, %arg4: memref<1x32xf32, #tpu.memory_space<vmem>>, %arg5: memref<32x32xbf16, #tpu.memory_space<vmem>>, %arg6: memref<1x32xf32, #tpu.memory_space<vmem>>, %arg7: memref<32x32xbf16, #tpu.memory_space<vmem>>, %arg8: memref<1x32xf32, #tpu.memory_space<vmem>>, %arg9: memref<32x32xbf16, #tpu.memory_space<vmem>>, %arg10: memref<1x32xf32, #tpu.memory_space<vmem>>, %arg11: memref<1x32xf32, #tpu.memory_space<vmem>>, %arg12: memref<1x32xf32, #tpu.memory_space<vmem>>, %arg13: memref<1x8x32xf32, #tpu.memory_space<vmem>>, %arg14: memref<4x8x8xbf16, #tpu.memory_space<vmem>>, %arg15: memref<4x8x8xbf16, #tpu.memory_space<vmem>>, %arg16: memref<4x8x8xbf16, #tpu.memory_space<vmem>>, %arg17: memref<4x8x8xbf16, #tpu.memory_space<vmem>>, %arg18: memref<8x32xbf16, #tpu.memory_space<vmem>>) attributes {dimension_semantics = [#tpu.dimension_semantics<parallel>], iteration_bounds = array<i64: 2>, scalar_prefetch = 0 : i64, scratch_operands = 5 : i64, tpu.core_type = #tpu.core_type<tc>, window_params = [{transform_indices = @transform_0, window_bounds = array<i64: 1, 8, 32>}, {transform_indices = @transform_1, window_bounds = array<i64: 1, 1, 8>}, {pipeline_mode = #tpu.pipeline_mode<synchronous>, transform_indices = @transform_2, window_bounds = array<i64: 32, 32>}, {pipeline_mode = #tpu.pipeline_mode<synchronous>, transform_indices = @transform_3, window_bounds = array<i64: 1, 32>}, {pipeline_mode = #tpu.pipeline_mode<synchronous>, transform_indices = @transform_4, window_bounds = array<i64: 32, 32>}, {pipeline_mode = #tpu.pipeline_mode<synchronous>, transform_indices = @transform_5, window_bounds = array<i64: 1, 32>}, {pipeline_mode = #tpu.pipeline_mode<synchronous>, transform_indices = @transform_6, window_bounds = array<i64: 32, 32>}, {pipeline_mode = #tpu.pipeline_mode<synchronous>, transform_indices = @transform_7, window_bounds = array<i64: 1, 32>}, {pipeline_mode = #tpu.pipeline_mode<synchronous>, transform_indices = @transform_8, window_bounds = array<i64: 32, 32>}, {pipeline_mode = #tpu.pipeline_mode<synchronous>, transform_indices = @transform_9, window_bounds = array<i64: 1, 32>}, {pipeline_mode = #tpu.pipeline_mode<synchronous>, transform_indices = @transform_10, window_bounds = array<i64: 1, 32>}, {pipeline_mode = #tpu.pipeline_mode<synchronous>, transform_indices = @transform_11, window_bounds = array<i64: 1, 32>}, {transform_indices = @transform_12, window_bounds = array<i64: 1, 8, 32>}]} {
    %c0 = arith.constant 0 : index
    %c0_0 = arith.constant 0 : index
    %c0_1 = arith.constant 0 : index
    %0 = vector.load %arg1[%c0, %c0_0, %c0_1] : memref<1x8x32xf32, #tpu.memory_space<vmem>>, vector<1x8x32xf32>
    %1 = vector.shape_cast %0 : vector<1x8x32xf32> to vector<8x32xf32>
    %2 = arith.truncf %1 : vector<8x32xf32> to vector<8x32xbf16>
    %c0_2 = arith.constant 0 : index
    %c0_3 = arith.constant 0 : index
    %c0_4 = arith.constant 0 : index
    %3 = vector.load %arg2[%c0_2, %c0_3, %c0_4] : memref<1x1x8xf32, #tpu.memory_space<vmem>>, vector<1x1x8xf32>
    %4 = vector.shape_cast %3 : vector<1x1x8xf32> to vector<1x8xf32>
    %c0_5 = arith.constant 0 : index
    %c0_6 = arith.constant 0 : index
    %5 = vector.load %arg3[%c0_5, %c0_6] : memref<32x32xbf16, #tpu.memory_space<vmem>>, vector<32x32xbf16>
    %cst = arith.constant dense<0.000000e+00> : vector<8x32xf32>
    %6 = tpu.matmul %2, %5, %cst {dimension_numbers = #tpu.dot_dimension_numbers<[1], [1], [0], [0], [0, 0, 1, 0], [], []>} : vector<8x32xbf16>, vector<32x32xbf16>, vector<8x32xf32> -> vector<8x32xf32>
    %c0_7 = arith.constant 0 : index
    %c0_8 = arith.constant 0 : index
    %7 = vector.load %arg4[%c0_7, %c0_8] : memref<1x32xf32, #tpu.memory_space<vmem>>, vector<1x32xf32>
    %8 = vector.broadcast %7 : vector<1x32xf32> to vector<8x32xf32>
    %9 = arith.addf %6, %8 : vector<8x32xf32>
    %cst_9 = arith.constant 0.353553385 : f32
    %10 = vector.broadcast %cst_9 : f32 to vector<8x32xf32>
    %11 = arith.mulf %9, %10 : vector<8x32xf32>
    %c0_10 = arith.constant 0 : index
    %c0_11 = arith.constant 0 : index
    %12 = vector.load %arg5[%c0_10, %c0_11] : memref<32x32xbf16, #tpu.memory_space<vmem>>, vector<32x32xbf16>
    %cst_12 = arith.constant dense<0.000000e+00> : vector<8x32xf32>
    %13 = tpu.matmul %2, %12, %cst_12 {dimension_numbers = #tpu.dot_dimension_numbers<[1], [1], [0], [0], [0, 0, 1, 0], [], []>} : vector<8x32xbf16>, vector<32x32xbf16>, vector<8x32xf32> -> vector<8x32xf32>
    %c0_13 = arith.constant 0 : index
    %c0_14 = arith.constant 0 : index
    %14 = vector.load %arg6[%c0_13, %c0_14] : memref<1x32xf32, #tpu.memory_space<vmem>>, vector<1x32xf32>
    %15 = vector.broadcast %14 : vector<1x32xf32> to vector<8x32xf32>
    %16 = arith.addf %13, %15 : vector<8x32xf32>
    %c0_15 = arith.constant 0 : index
    %c0_16 = arith.constant 0 : index
    %17 = vector.load %arg7[%c0_15, %c0_16] : memref<32x32xbf16, #tpu.memory_space<vmem>>, vector<32x32xbf16>
    %cst_17 = arith.constant dense<0.000000e+00> : vector<8x32xf32>
    %18 = tpu.matmul %2, %17, %cst_17 {dimension_numbers = #tpu.dot_dimension_numbers<[1], [1], [0], [0], [0, 0, 1, 0], [], []>} : vector<8x32xbf16>, vector<32x32xbf16>, vector<8x32xf32> -> vector<8x32xf32>
    %c0_18 = arith.constant 0 : index
    %c0_19 = arith.constant 0 : index
    %19 = vector.load %arg8[%c0_18, %c0_19] : memref<1x32xf32, #tpu.memory_space<vmem>>, vector<1x32xf32>
    %20 = vector.broadcast %19 : vector<1x32xf32> to vector<8x32xf32>
    %21 = arith.addf %18, %20 : vector<8x32xf32>
    %22 = vector.extract_strided_slice %11 {offsets = [0, 0], sizes = [8, 8], strides = [1, 1]} : vector<8x32xf32> to vector<8x8xf32>
    %23 = arith.truncf %22 : vector<8x8xf32> to vector<8x8xbf16>
    %c0_20 = arith.constant 0 : index
    %c0_21 = arith.constant 0 : index
    %c0_22 = arith.constant 0 : index
    %24 = vector.load %arg14[%c0_20, %c0_21, %c0_22] : memref<4x8x8xbf16, #tpu.memory_space<vmem>>, vector<1x8x8xbf16>
    %25 = vector.shape_cast %24 : vector<1x8x8xbf16> to vector<8x8xbf16>
    %26 = vector.shape_cast %23 : vector<8x8xbf16> to vector<1x8x8xbf16>
    tpu.vector_store %arg14[%c0_20, %c0_21, %c0_22], %26 {strides = array<i32>} : memref<4x8x8xbf16, #tpu.memory_space<vmem>>, vector<1x8x8xbf16>,
    %27 = vector.extract_strided_slice %16 {offsets = [0, 0], sizes = [8, 8], strides = [1, 1]} : vector<8x32xf32> to vector<8x8xf32>
    %28 = arith.truncf %27 : vector<8x8xf32> to vector<8x8xbf16>
    %c0_23 = arith.constant 0 : index
    %c0_24 = arith.constant 0 : index
    %c0_25 = arith.constant 0 : index
    %29 = vector.load %arg15[%c0_23, %c0_24, %c0_25] : memref<4x8x8xbf16, #tpu.memory_space<vmem>>, vector<1x8x8xbf16>
    %30 = vector.shape_cast %29 : vector<1x8x8xbf16> to vector<8x8xbf16>
    %31 = vector.shape_cast %28 : vector<8x8xbf16> to vector<1x8x8xbf16>
    tpu.vector_store %arg15[%c0_23, %c0_24, %c0_25], %31 {strides = array<i32>} : memref<4x8x8xbf16, #tpu.memory_space<vmem>>, vector<1x8x8xbf16>,
    %32 = vector.extract_strided_slice %21 {offsets = [0, 0], sizes = [8, 8], strides = [1, 1]} : vector<8x32xf32> to vector<8x8xf32>
    %33 = arith.truncf %32 : vector<8x8xf32> to vector<8x8xbf16>
    %c0_26 = arith.constant 0 : index
    %c0_27 = arith.constant 0 : index
    %c0_28 = arith.constant 0 : index
    %34 = vector.load %arg16[%c0_26, %c0_27, %c0_28] : memref<4x8x8xbf16, #tpu.memory_space<vmem>>, vector<1x8x8xbf16>
    %35 = vector.shape_cast %34 : vector<1x8x8xbf16> to vector<8x8xbf16>
    %36 = vector.shape_cast %33 : vector<8x8xbf16> to vector<1x8x8xbf16>
    tpu.vector_store %arg16[%c0_26, %c0_27, %c0_28], %36 {strides = array<i32>} : memref<4x8x8xbf16, #tpu.memory_space<vmem>>, vector<1x8x8xbf16>,
    %37 = vector.extract_strided_slice %11 {offsets = [0, 8], sizes = [8, 8], strides = [1, 1]} : vector<8x32xf32> to vector<8x8xf32>
    %38 = arith.truncf %37 : vector<8x8xf32> to vector<8x8xbf16>
    %c1 = arith.constant 1 : index
    %c0_29 = arith.constant 0 : index
    %c0_30 = arith.constant 0 : index
    %39 = vector.load %arg14[%c1, %c0_29, %c0_30] : memref<4x8x8xbf16, #tpu.memory_space<vmem>>, vector<1x8x8xbf16>
    %40 = vector.shape_cast %39 : vector<1x8x8xbf16> to vector<8x8xbf16>
    %41 = vector.shape_cast %38 : vector<8x8xbf16> to vector<1x8x8xbf16>
    tpu.vector_store %arg14[%c1, %c0_29, %c0_30], %41 {strides = array<i32>} : memref<4x8x8xbf16, #tpu.memory_space<vmem>>, vector<1x8x8xbf16>,
    %42 = vector.extract_strided_slice %16 {offsets = [0, 8], sizes = [8, 8], strides = [1, 1]} : vector<8x32xf32> to vector<8x8xf32>
    %43 = arith.truncf %42 : vector<8x8xf32> to vector<8x8xbf16>
    %c1_31 = arith.constant 1 : index
    %c0_32 = arith.constant 0 : index
    %c0_33 = arith.constant 0 : index
    %44 = vector.load %arg15[%c1_31, %c0_32, %c0_33] : memref<4x8x8xbf16, #tpu.memory_space<vmem>>, vector<1x8x8xbf16>
    %45 = vector.shape_cast %44 : vector<1x8x8xbf16> to vector<8x8xbf16>
    %46 = vector.shape_cast %43 : vector<8x8xbf16> to vector<1x8x8xbf16>
    tpu.vector_store %arg15[%c1_31, %c0_32, %c0_33], %46 {strides = array<i32>} : memref<4x8x8xbf16, #tpu.memory_space<vmem>>, vector<1x8x8xbf16>,
    %47 = vector.extract_strided_slice %21 {offsets = [0, 8], sizes = [8, 8], strides = [1, 1]} : vector<8x32xf32> to vector<8x8xf32>
    %48 = arith.truncf %47 : vector<8x8xf32> to vector<8x8xbf16>
    %c1_34 = arith.constant 1 : index
    %c0_35 = arith.constant 0 : index
    %c0_36 = arith.constant 0 : index
    %49 = vector.load %arg16[%c1_34, %c0_35, %c0_36] : memref<4x8x8xbf16, #tpu.memory_space<vmem>>, vector<1x8x8xbf16>
    %50 = vector.shape_cast %49 : vector<1x8x8xbf16> to vector<8x8xbf16>
    %51 = vector.shape_cast %48 : vector<8x8xbf16> to vector<1x8x8xbf16>
    tpu.vector_store %arg16[%c1_34, %c0_35, %c0_36], %51 {strides = array<i32>} : memref<4x8x8xbf16, #tpu.memory_space<vmem>>, vector<1x8x8xbf16>,
    %52 = vector.extract_strided_slice %11 {offsets = [0, 16], sizes = [8, 8], strides = [1, 1]} : vector<8x32xf32> to vector<8x8xf32>
    %53 = arith.truncf %52 : vector<8x8xf32> to vector<8x8xbf16>
    %c2 = arith.constant 2 : index
    %c0_37 = arith.constant 0 : index
    %c0_38 = arith.constant 0 : index
    %54 = vector.load %arg14[%c2, %c0_37, %c0_38] : memref<4x8x8xbf16, #tpu.memory_space<vmem>>, vector<1x8x8xbf16>
    %55 = vector.shape_cast %54 : vector<1x8x8xbf16> to vector<8x8xbf16>
    %56 = vector.shape_cast %53 : vector<8x8xbf16> to vector<1x8x8xbf16>
    tpu.vector_store %arg14[%c2, %c0_37, %c0_38], %56 {strides = array<i32>} : memref<4x8x8xbf16, #tpu.memory_space<vmem>>, vector<1x8x8xbf16>,
    %57 = vector.extract_strided_slice %16 {offsets = [0, 16], sizes = [8, 8], strides = [1, 1]} : vector<8x32xf32> to vector<8x8xf32>
    %58 = arith.truncf %57 : vector<8x8xf32> to vector<8x8xbf16>
    %c2_39 = arith.constant 2 : index
    %c0_40 = arith.constant 0 : index
    %c0_41 = arith.constant 0 : index
    %59 = vector.load %arg15[%c2_39, %c0_40, %c0_41] : memref<4x8x8xbf16, #tpu.memory_space<vmem>>, vector<1x8x8xbf16>
    %60 = vector.shape_cast %59 : vector<1x8x8xbf16> to vector<8x8xbf16>
    %61 = vector.shape_cast %58 : vector<8x8xbf16> to vector<1x8x8xbf16>
    tpu.vector_store %arg15[%c2_39, %c0_40, %c0_41], %61 {strides = array<i32>} : memref<4x8x8xbf16, #tpu.memory_space<vmem>>, vector<1x8x8xbf16>,
    %62 = vector.extract_strided_slice %21 {offsets = [0, 16], sizes = [8, 8], strides = [1, 1]} : vector<8x32xf32> to vector<8x8xf32>
    %63 = arith.truncf %62 : vector<8x8xf32> to vector<8x8xbf16>
    %c2_42 = arith.constant 2 : index
    %c0_43 = arith.constant 0 : index
    %c0_44 = arith.constant 0 : index
    %64 = vector.load %arg16[%c2_42, %c0_43, %c0_44] : memref<4x8x8xbf16, #tpu.memory_space<vmem>>, vector<1x8x8xbf16>
    %65 = vector.shape_cast %64 : vector<1x8x8xbf16> to vector<8x8xbf16>
    %66 = vector.shape_cast %63 : vector<8x8xbf16> to vector<1x8x8xbf16>
    tpu.vector_store %arg16[%c2_42, %c0_43, %c0_44], %66 {strides = array<i32>} : memref<4x8x8xbf16, #tpu.memory_space<vmem>>, vector<1x8x8xbf16>,
    %67 = vector.extract_strided_slice %11 {offsets = [0, 24], sizes = [8, 8], strides = [1, 1]} : vector<8x32xf32> to vector<8x8xf32>
    %68 = arith.truncf %67 : vector<8x8xf32> to vector<8x8xbf16>
    %c3 = arith.constant 3 : index
    %c0_45 = arith.constant 0 : index
    %c0_46 = arith.constant 0 : index
    %69 = vector.load %arg14[%c3, %c0_45, %c0_46] : memref<4x8x8xbf16, #tpu.memory_space<vmem>>, vector<1x8x8xbf16>
    %70 = vector.shape_cast %69 : vector<1x8x8xbf16> to vector<8x8xbf16>
    %71 = vector.shape_cast %68 : vector<8x8xbf16> to vector<1x8x8xbf16>
    tpu.vector_store %arg14[%c3, %c0_45, %c0_46], %71 {strides = array<i32>} : memref<4x8x8xbf16, #tpu.memory_space<vmem>>, vector<1x8x8xbf16>,
    %72 = vector.extract_strided_slice %16 {offsets = [0, 24], sizes = [8, 8], strides = [1, 1]} : vector<8x32xf32> to vector<8x8xf32>
    %73 = arith.truncf %72 : vector<8x8xf32> to vector<8x8xbf16>
    %c3_47 = arith.constant 3 : index
    %c0_48 = arith.constant 0 : index
    %c0_49 = arith.constant 0 : index
    %74 = vector.load %arg15[%c3_47, %c0_48, %c0_49] : memref<4x8x8xbf16, #tpu.memory_space<vmem>>, vector<1x8x8xbf16>
    %75 = vector.shape_cast %74 : vector<1x8x8xbf16> to vector<8x8xbf16>
    %76 = vector.shape_cast %73 : vector<8x8xbf16> to vector<1x8x8xbf16>
    tpu.vector_store %arg15[%c3_47, %c0_48, %c0_49], %76 {strides = array<i32>} : memref<4x8x8xbf16, #tpu.memory_space<vmem>>, vector<1x8x8xbf16>,
    %77 = vector.extract_strided_slice %21 {offsets = [0, 24], sizes = [8, 8], strides = [1, 1]} : vector<8x32xf32> to vector<8x8xf32>
    %78 = arith.truncf %77 : vector<8x8xf32> to vector<8x8xbf16>
    %c3_50 = arith.constant 3 : index
    %c0_51 = arith.constant 0 : index
    %c0_52 = arith.constant 0 : index
    %79 = vector.load %arg16[%c3_50, %c0_51, %c0_52] : memref<4x8x8xbf16, #tpu.memory_space<vmem>>, vector<1x8x8xbf16>
    %80 = vector.shape_cast %79 : vector<1x8x8xbf16> to vector<8x8xbf16>
    %81 = vector.shape_cast %78 : vector<8x8xbf16> to vector<1x8x8xbf16>
    tpu.vector_store %arg16[%c3_50, %c0_51, %c0_52], %81 {strides = array<i32>} : memref<4x8x8xbf16, #tpu.memory_space<vmem>>, vector<1x8x8xbf16>,
    %c0_i32 = arith.constant 0 : i32
    %c4_i32 = arith.constant 4 : i32
    %82 = arith.addi %c0_i32, %c4_i32 : i32
    %c1_i32 = arith.constant 1 : i32
    scf.for %arg19 = %c0_i32 to %82 step %c1_i32  : i32 {
      %129 = arith.index_cast %arg19 : i32 to index
      %c0_90 = arith.constant 0 : index
      %c0_91 = arith.constant 0 : index
      %130 = vector.load %arg14[%129, %c0_90, %c0_91] : memref<4x8x8xbf16, #tpu.memory_space<vmem>>, vector<1x8x8xbf16>
      %131 = vector.shape_cast %130 : vector<1x8x8xbf16> to vector<8x8xbf16>
      %132 = arith.index_cast %arg19 : i32 to index
      %c0_92 = arith.constant 0 : index
      %c0_93 = arith.constant 0 : index
      %133 = vector.load %arg15[%132, %c0_92, %c0_93] : memref<4x8x8xbf16, #tpu.memory_space<vmem>>, vector<1x8x8xbf16>
      %134 = vector.shape_cast %133 : vector<1x8x8xbf16> to vector<8x8xbf16>
      %135 = arith.index_cast %arg19 : i32 to index
      %c0_94 = arith.constant 0 : index
      %c0_95 = arith.constant 0 : index
      %136 = vector.load %arg16[%135, %c0_94, %c0_95] : memref<4x8x8xbf16, #tpu.memory_space<vmem>>, vector<1x8x8xbf16>
      %137 = vector.shape_cast %136 : vector<1x8x8xbf16> to vector<8x8xbf16>
      %cst_96 = arith.constant dense<0.000000e+00> : vector<8x8xf32>
      %138 = tpu.matmul %131, %134, %cst_96 {dimension_numbers = #tpu.dot_dimension_numbers<[1], [1], [0], [0], [0, 0, 1, 0], [], []>} : vector<8x8xbf16>, vector<8x8xbf16>, vector<8x8xf32> -> vector<8x8xf32>
      %139 = vector.broadcast %4 : vector<1x8xf32> to vector<8x8xf32>
      %140 = arith.addf %138, %139 : vector<8x8xf32>
      %cst_97 = arith.constant dense<0xFF800000> : vector<8xf32>
      %141 = vector.multi_reduction <maximumf>, %140, %cst_97 [1] : vector<8x8xf32> to vector<8xf32>
      %142 = vector.shape_cast %141 : vector<8xf32> to vector<8x1xf32>
      %143 = vector.broadcast %142 : vector<8x1xf32> to vector<8x8xf32>
      %144 = arith.subf %140, %143 : vector<8x8xf32>
      %145 = math.exp %144 : vector<8x8xf32>
      %cst_98 = arith.constant dense<0.000000e+00> : vector<8xf32>
      %146 = vector.multi_reduction <add>, %145, %cst_98 [1] : vector<8x8xf32> to vector<8xf32>
      %147 = vector.shape_cast %146 : vector<8xf32> to vector<8x1xf32>
      %148 = arith.truncf %145 : vector<8x8xf32> to vector<8x8xbf16>
      %cst_99 = arith.constant dense<0.000000e+00> : vector<8x8xf32>
      %149 = tpu.matmul %148, %137, %cst_99 {dimension_numbers = #tpu.dot_dimension_numbers<[1], [0], [0], [1], [0, 0, 1, 1], [], []>} : vector<8x8xbf16>, vector<8x8xbf16>, vector<8x8xf32> -> vector<8x8xf32>
      %150 = tpu.reciprocal %147 {approx = true} : vector<8x1xf32> -> vector<8x1xf32>
      %151 = vector.broadcast %150 : vector<8x1xf32> to vector<8x8xf32>
      %152 = arith.mulf %149, %151 : vector<8x8xf32>
      %153 = arith.truncf %152 : vector<8x8xf32> to vector<8x8xbf16>
      %154 = arith.index_cast %arg19 : i32 to index
      %c0_100 = arith.constant 0 : index
      %c0_101 = arith.constant 0 : index
      %155 = vector.load %arg17[%154, %c0_100, %c0_101] : memref<4x8x8xbf16, #tpu.memory_space<vmem>>, vector<1x8x8xbf16>
      %156 = vector.shape_cast %155 : vector<1x8x8xbf16> to vector<8x8xbf16>
      %157 = vector.shape_cast %153 : vector<8x8xbf16> to vector<1x8x8xbf16>
      tpu.vector_store %arg17[%154, %c0_100, %c0_101], %157 {strides = array<i32>} : memref<4x8x8xbf16, #tpu.memory_space<vmem>>, vector<1x8x8xbf16>,
    }
    %c4_i32_53 = arith.constant 4 : i32
    %c0_54 = arith.constant 0 : index
    %c0_55 = arith.constant 0 : index
    %c0_56 = arith.constant 0 : index
    %83 = vector.load %arg17[%c0_54, %c0_55, %c0_56] : memref<4x8x8xbf16, #tpu.memory_space<vmem>>, vector<1x8x8xbf16>
    %84 = vector.shape_cast %83 : vector<1x8x8xbf16> to vector<8x8xbf16>
    %c0_57 = arith.constant 0 : index
    %c0_58 = arith.constant 0 : index
    %85 = vector.load %arg18[%c0_57, %c0_58] : memref<8x32xbf16, #tpu.memory_space<vmem>>, vector<8x8xbf16>
    tpu.vector_store %arg18[%c0_57, %c0_58], %84 {strides = array<i32>} : memref<8x32xbf16, #tpu.memory_space<vmem>>, vector<8x8xbf16>,
    %c1_59 = arith.constant 1 : index
    %c0_60 = arith.constant 0 : index
    %c0_61 = arith.constant 0 : index
    %86 = vector.load %arg17[%c1_59, %c0_60, %c0_61] : memref<4x8x8xbf16, #tpu.memory_space<vmem>>, vector<1x8x8xbf16>
    %87 = vector.shape_cast %86 : vector<1x8x8xbf16> to vector<8x8xbf16>
    %c0_62 = arith.constant 0 : index
    %c8 = arith.constant 8 : index
    %88 = vector.load %arg18[%c0_62, %c8] : memref<8x32xbf16, #tpu.memory_space<vmem>>, vector<8x8xbf16>
    tpu.vector_store %arg18[%c0_62, %c8], %87 {strides = array<i32>} : memref<8x32xbf16, #tpu.memory_space<vmem>>, vector<8x8xbf16>,
    %c2_63 = arith.constant 2 : index
    %c0_64 = arith.constant 0 : index
    %c0_65 = arith.constant 0 : index
    %89 = vector.load %arg17[%c2_63, %c0_64, %c0_65] : memref<4x8x8xbf16, #tpu.memory_space<vmem>>, vector<1x8x8xbf16>
    %90 = vector.shape_cast %89 : vector<1x8x8xbf16> to vector<8x8xbf16>
    %c0_66 = arith.constant 0 : index
    %c16 = arith.constant 16 : index
    %91 = vector.load %arg18[%c0_66, %c16] : memref<8x32xbf16, #tpu.memory_space<vmem>>, vector<8x8xbf16>
    tpu.vector_store %arg18[%c0_66, %c16], %90 {strides = array<i32>} : memref<8x32xbf16, #tpu.memory_space<vmem>>, vector<8x8xbf16>,
    %c3_67 = arith.constant 3 : index
    %c0_68 = arith.constant 0 : index
    %c0_69 = arith.constant 0 : index
    %92 = vector.load %arg17[%c3_67, %c0_68, %c0_69] : memref<4x8x8xbf16, #tpu.memory_space<vmem>>, vector<1x8x8xbf16>
    %93 = vector.shape_cast %92 : vector<1x8x8xbf16> to vector<8x8xbf16>
    %c0_70 = arith.constant 0 : index
    %c24 = arith.constant 24 : index
    %94 = vector.load %arg18[%c0_70, %c24] : memref<8x32xbf16, #tpu.memory_space<vmem>>, vector<8x8xbf16>
    tpu.vector_store %arg18[%c0_70, %c24], %93 {strides = array<i32>} : memref<8x32xbf16, #tpu.memory_space<vmem>>, vector<8x8xbf16>,
    %c0_71 = arith.constant 0 : index
    %c0_72 = arith.constant 0 : index
    %95 = vector.load %arg18[%c0_71, %c0_72] : memref<8x32xbf16, #tpu.memory_space<vmem>>, vector<8x32xbf16>
    %c0_73 = arith.constant 0 : index
    %c0_74 = arith.constant 0 : index
    %96 = vector.load %arg9[%c0_73, %c0_74] : memref<32x32xbf16, #tpu.memory_space<vmem>>, vector<32x32xbf16>
    %cst_75 = arith.constant dense<0.000000e+00> : vector<8x32xf32>
    %97 = tpu.matmul %95, %96, %cst_75 {dimension_numbers = #tpu.dot_dimension_numbers<[1], [1], [0], [0], [0, 0, 1, 0], [], []>} : vector<8x32xbf16>, vector<32x32xbf16>, vector<8x32xf32> -> vector<8x32xf32>
    %c0_76 = arith.constant 0 : index
    %c0_77 = arith.constant 0 : index
    %98 = vector.load %arg10[%c0_76, %c0_77] : memref<1x32xf32, #tpu.memory_space<vmem>>, vector<1x32xf32>
    %99 = vector.broadcast %98 : vector<1x32xf32> to vector<8x32xf32>
    %100 = arith.addf %97, %99 : vector<8x32xf32>
    %101 = arith.addf %100, %1 : vector<8x32xf32>
    %cst_78 = arith.constant dense<0.000000e+00> : vector<8xf32>
    %102 = vector.multi_reduction <add>, %101, %cst_78 [1] : vector<8x32xf32> to vector<8xf32>
    %103 = vector.shape_cast %102 : vector<8xf32> to vector<8x1xf32>
    %cst_79 = arith.constant 3.200000e+01 : f32
    %104 = vector.broadcast %cst_79 : f32 to vector<8x1xf32>
    %105 = arith.divf %103, %104 : vector<8x1xf32>
    %106 = vector.broadcast %105 : vector<8x1xf32> to vector<8x32xf32>
    %107 = arith.subf %101, %106 : vector<8x32xf32>
    %108 = arith.mulf %107, %107 : vector<8x32xf32>
    %cst_80 = arith.constant dense<0.000000e+00> : vector<8xf32>
    %109 = vector.multi_reduction <add>, %108, %cst_80 [1] : vector<8x32xf32> to vector<8xf32>
    %110 = vector.shape_cast %109 : vector<8xf32> to vector<8x1xf32>
    %cst_81 = arith.constant 3.200000e+01 : f32
    %111 = vector.broadcast %cst_81 : f32 to vector<8x1xf32>
    %112 = arith.divf %110, %111 : vector<8x1xf32>
    %113 = vector.broadcast %105 : vector<8x1xf32> to vector<8x32xf32>
    %114 = arith.subf %101, %113 : vector<8x32xf32>
    %cst_82 = arith.constant 9.99999996E-13 : f32
    %115 = vector.broadcast %cst_82 : f32 to vector<8x1xf32>
    %116 = arith.addf %112, %115 : vector<8x1xf32>
    %117 = math.rsqrt %116 : vector<8x1xf32>
    %118 = vector.broadcast %117 : vector<8x1xf32> to vector<8x32xf32>
    %119 = arith.mulf %114, %118 : vector<8x32xf32>
    %c0_83 = arith.constant 0 : index
    %c0_84 = arith.constant 0 : index
    %120 = vector.load %arg11[%c0_83, %c0_84] : memref<1x32xf32, #tpu.memory_space<vmem>>, vector<1x32xf32>
    %121 = vector.broadcast %120 : vector<1x32xf32> to vector<8x32xf32>
    %122 = arith.mulf %121, %119 : vector<8x32xf32>
    %c0_85 = arith.constant 0 : index
    %c0_86 = arith.constant 0 : index
    %123 = vector.load %arg12[%c0_85, %c0_86] : memref<1x32xf32, #tpu.memory_space<vmem>>, vector<1x32xf32>
    %124 = vector.broadcast %123 : vector<1x32xf32> to vector<8x32xf32>
    %125 = arith.addf %122, %124 : vector<8x32xf32>
    %c0_87 = arith.constant 0 : index
    %c0_88 = arith.constant 0 : index
    %c0_89 = arith.constant 0 : index
    %126 = vector.load %arg13[%c0_87, %c0_88, %c0_89] : memref<1x8x32xf32, #tpu.memory_space<vmem>>, vector<1x8x32xf32>
    %127 = vector.shape_cast %126 : vector<1x8x32xf32> to vector<8x32xf32>
    %128 = vector.shape_cast %125 : vector<8x32xf32> to vector<1x8x32xf32>
    tpu.vector_store %arg13[%c0_87, %c0_88, %c0_89], %128 {strides = array<i32>} : memref<1x8x32xf32, #tpu.memory_space<vmem>>, vector<1x8x32xf32>,
    return
  }
  func.func @transform_0(%arg0: i32) -> (i32, i32, i32) {
    %c0_i32 = arith.constant 0 : i32
    %c0_i32_0 = arith.constant 0 : i32
    %c0_i32_1 = arith.constant 0 : i32
    return %arg0, %c0_i32, %c0_i32_0 : i32, i32, i32
  }
  func.func @transform_1(%arg0: i32) -> (i32, i32, i32) {
    %c0_i32 = arith.constant 0 : i32
    %c0_i32_0 = arith.constant 0 : i32
    %c0_i32_1 = arith.constant 0 : i32
    return %arg0, %c0_i32, %c0_i32_0 : i32, i32, i32
  }
  func.func @transform_2(%arg0: i32) -> (i32, i32) {
    %c0_i32 = arith.constant 0 : i32
    %c0_i32_0 = arith.constant 0 : i32
    %c0_i32_1 = arith.constant 0 : i32
    return %c0_i32, %c0_i32_0 : i32, i32
  }
  func.func @transform_3(%arg0: i32) -> (i32, i32) {
    %c0_i32 = arith.constant 0 : i32
    %c0_i32_0 = arith.constant 0 : i32
    %c0_i32_1 = arith.constant 0 : i32
    return %c0_i32, %c0_i32_0 : i32, i32
  }
  func.func @transform_4(%arg0: i32) -> (i32, i32) {
    %c0_i32 = arith.constant 0 : i32
    %c0_i32_0 = arith.constant 0 : i32
    %c0_i32_1 = arith.constant 0 : i32
    return %c0_i32, %c0_i32_0 : i32, i32
  }
  func.func @transform_5(%arg0: i32) -> (i32, i32) {
    %c0_i32 = arith.constant 0 : i32
    %c0_i32_0 = arith.constant 0 : i32
    %c0_i32_1 = arith.constant 0 : i32
    return %c0_i32, %c0_i32_0 : i32, i32
  }
  func.func @transform_6(%arg0: i32) -> (i32, i32) {
    %c0_i32 = arith.constant 0 : i32
    %c0_i32_0 = arith.constant 0 : i32
    %c0_i32_1 = arith.constant 0 : i32
    return %c0_i32, %c0_i32_0 : i32, i32
  }
  func.func @transform_7(%arg0: i32) -> (i32, i32) {
    %c0_i32 = arith.constant 0 : i32
    %c0_i32_0 = arith.constant 0 : i32
    %c0_i32_1 = arith.constant 0 : i32
    return %c0_i32, %c0_i32_0 : i32, i32
  }
  func.func @transform_8(%arg0: i32) -> (i32, i32) {
    %c0_i32 = arith.constant 0 : i32
    %c0_i32_0 = arith.constant 0 : i32
    %c0_i32_1 = arith.constant 0 : i32
    return %c0_i32, %c0_i32_0 : i32, i32
  }
  func.func @transform_9(%arg0: i32) -> (i32, i32) {
    %c0_i32 = arith.constant 0 : i32
    %c0_i32_0 = arith.constant 0 : i32
    %c0_i32_1 = arith.constant 0 : i32
    return %c0_i32, %c0_i32_0 : i32, i32
  }
  func.func @transform_10(%arg0: i32) -> (i32, i32) {
    %c0_i32 = arith.constant 0 : i32
    %c0_i32_0 = arith.constant 0 : i32
    %c0_i32_1 = arith.constant 0 : i32
    return %c0_i32, %c0_i32_0 : i32, i32
  }
  func.func @transform_11(%arg0: i32) -> (i32, i32) {
    %c0_i32 = arith.constant 0 : i32
    %c0_i32_0 = arith.constant 0 : i32
    %c0_i32_1 = arith.constant 0 : i32
    return %c0_i32, %c0_i32_0 : i32, i32
  }
  func.func @transform_12(%arg0: i32) -> (i32, i32, i32) {
    %c0_i32 = arith.constant 0 : i32
    %c0_i32_0 = arith.constant 0 : i32
    %c0_i32_1 = arith.constant 0 : i32
    return %arg0, %c0_i32, %c0_i32_0 : i32, i32, i32
  }
}

</mosaic_0001>

<bundles_post_ra>
// kernel: tpu_custom_call.1
= control target key start
LH: loop header
LB: loop body
LE: loop exit
PB: predicated region body
PF: predicated region fallthrough
CT: control target
= control target key end

     0   :  { %s2029_s0 = inlined_call_operand.hbm [shape: f32[2,8,32], index: 0, kind: input, shape index: {}]   ;;  %s2030_s1 = inlined_call_operand.vmem [shape: f32[2,1,8], index: 1, kind: input, shape index: {}]   ;;  %s2031_s2 = inlined_call_operand.hbm [shape: bf16[32,32], index: 2, kind: input, shape index: {}]   ;;  %s2032_s3 = inlined_call_operand.vmem [shape: f32[1,32], index: 3, kind: input, shape index: {}]   ;;  %s2033_s4 = inlined_call_operand.hbm [shape: bf16[32,32], index: 4, kind: input, shape index: {}]   ;;  %s2034_s5 = inlined_call_operand.vmem [shape: f32[1,32], index: 5, kind: input, shape index: {}]   ;;  %s2035_s6 = inlined_call_operand.vmem [shape: bf16[32,32], index: 6, kind: input, shape index: {}]   ;;  %s2036_s7 = inlined_call_operand.vmem [shape: f32[1,32], index: 7, kind: input, shape index: {}]   ;;  %s2037_s8 = inlined_call_operand.hbm [shape: bf16[32,32], index: 8, kind: input, shape index: {}]   ;;  %s2038_s9 = inlined_call_operand.vmem [shape: f32[1,32], index: 9, kind: input, shape index: {}]   ;;  %s2039_s10 = inlined_call_operand.vmem [shape: f32[1,32], index: 10, kind: input, shape index: {}]   ;;  %s2040_s11 = inlined_call_operand.vmem [shape: f32[1,32], index: 11, kind: input, shape index: {}]   ;;  %s2041_s12 = inlined_call_operand.hbm [shape: f32[2,8,32], index: 12, kind: output, shape index: {}]  }
   0x1   :  { %2048 = sst [smem:[#allocation22_spill]] %s2038_s9 }
   0x2   :  { %2049 = sst [smem:[#allocation23_spill]] %s2039_s10 }
   0x3   :  { %2050 = sst [smem:[#allocation24_spill]] %s2040_s11 }
   0x4   :  { %2051 = sst [smem:[#allocation25_spill]] %s2041_s12 }
   0x5   :  { %17 = vsyncpa [#allocation8], 0 }
   0x6   :  { %19 = vsyncpa [#allocation8 + $0x1], 0 }
   0x7   :  { %20 = vsyncpa [#allocation11], 0 }
   0x8   :  { %21 = vsyncpa [#allocation14], 0 }
   0x9   :  { %22 = vsyncpa [#allocation9], 0 }
   0xa   :  { %24 = vsyncpa [#allocation9 + $0x1], 0  ;;  %s1653_s21 = smov 0   ;;  %s1655_s22 = smov 0  }
   0xb   :  { %s1657_s23 = smov 0   ;;  %s1659_s24 = smov 0  }
   0xc LB: > { %2052 = sst [smem:[#allocation20_spill]] %s1553_s21  ;;  %s1674_s25 = sadd.s32 4294967295, %s1565_s24   ;;  %s1565_s24 = sphi %s1659_s24, %s2080_s24   ;;  %s1561_s23 = sphi %s1657_s23, %s2079_s23   ;;  %s1557_s22 = sphi %s1655_s22, %s2078_s22   ;;  %s1553_s21 = sphi %s1653_s21, %s2077_s21  }
   0xd   : > { %s1153_s26 = sadd.s32 4294967294, %s1565_s24   ;;  %p50_p0 = scmp.ne.s32.totalorder %s1557_s22, %s1553_s21 }
   0xe   : > { %p2044_p1 = scmp.eq.s32.totalorder %s1674_s25, 0  ;;  %p316_p3 = scmp.eq.s32.totalorder %s1153_s26, 1 }
   0xf   : > { %p1154_p5 = scmp.ge.s32.totalorder %s1565_s24, 1  ;;  %p323_p7 = scmp.lt.s32.totalorder %s1565_s24, 3 }
  0x10   : > { %p1683_p4 = por %p2044_p1, %p50_p0  ;;  %p1688_p6 = por %p316_p3, %p50_p0 }
  0x11   : > { %p1693_p8 = pnand %p1154_p5, %p323_p7  ;;  %s1571_s30 = smov [#allocation10]  }
  0x12   : > { %s2053_s27 = scalar_select %p1683_p4, 1, 0 }
  0x13   : > { %s2054_s28 = scalar_select %p1688_p6, 1, 0 }
  0x14   : > { %s2056_s29 = scalar_select %p1693_p8, 1, 0 }
  0x15   : > { %2055 = sst [smem:[#allocation21_spill]] %s2054_s28  ;;  %s335_s13 = sshll.u32 %s1571_s30, 4  ;;  %s1697_s13 = int_to_ptr.vmem [resolvable:$true] %s335_s13 }
  0x16   : > { %p1278_p9 = pneg %p1693_p8  ;;  %s1572_s15 = smov [#allocation12]  }
  0x17   : > { %s351_s16 = sshll.u32 %s1572_s15, 4  ;;  %s1573_s17 = smov [#allocation13]   ;;  %s1708_s16 = int_to_ptr.vmem [resolvable:$true] %s351_s16 }
  0x18   : > { %p1704_p11 = pnand %p1278_p9, %p2044_p1  ;;  %s1710_s18 = sshll.u32 %s1573_s17, 4  ;;  %s374_s18 = int_to_ptr.vmem [resolvable:$true] %s1710_s18 }
  0x19   : > { %s1373_s26 = scalar_lea.hbm %s2031_s2, 256 }
  0x1a   : > { %p1374_p12 = scmp.ne.s32.totalorder %s2031_s2, %s1373_s26  ;;  %p1720_p13 = pneg %p1704_p11 }
  0x1b   : > { %p1380_p5 = scmp.lt.u32.totalorder %s1373_s26, %s2031_s2 }
  0x1c   : > { %p1376_p0 = pnand %p1720_p13, %p1374_p12 }
  0x1e   : > { %p1377_p3 = pneg %p1376_p0 }
  0x20   : > { %p1382_p7 = pnand %p1380_p5, %p1377_p3 }
  0x22   : > { %1385 = shalt.err (!%p1382_p7)
}
  0x23   : > { %s1386_s28 = scalar_lea.vmem %s1697_s13, 256  ;;  %p1394_p2 = scmp.lt.s32.totalorder %s1697_s13, %s1697_s13 }
  0x24   : > { %p1387_p9 = scmp.ne.s32.totalorder %s1697_s13, %s1386_s28  ;;  %p1395_p6 = scmp.lt.s32.totalorder %s1386_s28, %s1386_s28 }
  0x26   : > { %p1389_p10 = pnand %p1387_p9, %p1720_p13  ;;  %p1396_p12 = por %p1395_p6, %p1394_p2 }
  0x28   : > { %p1390_p1 = pneg %p1389_p10 }
  0x2a   : > { %p1397_p0 = pnand %p1396_p12, %p1390_p1 }
  0x2c   : > { %1400 = shalt.err (!%p1397_p0)
}
  0x2d   : > { %s1574_s19 = smov 64   ;;  %s1575_s20 = smov 4  }
  0x2e   : > { %1281 = dma.hbm_to_vmem [thread:$0]  (!%p1704_p11), %s2031_s2, 256, %s1697_s13, [#allocation11], %s1574_s19, %s1574_s19, %s1575_s20  }
  0x2f   : > { %s1401_s28 = scalar_lea.hbm %s2033_s4, 256 }
  0x30   : > { %p1402_p1 = scmp.ne.s32.totalorder %s2033_s4, %s1401_s28  ;;  %p1408_p10 = scmp.lt.u32.totalorder %s1401_s28, %s2033_s4 }
  0x32   : > { %p1404_p2 = pnand %p1402_p1, %p1720_p13 }
  0x34   : > { %p1405_p6 = pneg %p1404_p2 }
  0x36   : > { %p1410_p3 = pnand %p1408_p10, %p1405_p6 }
  0x38   : > { %1413 = shalt.err (!%p1410_p3)
}
  0x39   : > { %s1414_s13 = scalar_lea.vmem %s1708_s16, 256  ;;  %p1422_p12 = scmp.lt.s32.totalorder %s1708_s16, %s1708_s16 }
  0x3a   : > { %p1415_p5 = scmp.ne.s32.totalorder %s1708_s16, %s1414_s13  ;;  %p1423_p0 = scmp.lt.s32.totalorder %s1414_s13, %s1414_s13 }
  0x3c   : > { %p1417_p7 = pnand %p1415_p5, %p1720_p13  ;;  %p1424_p1 = por %p1423_p0, %p1422_p12 }
  0x3e   : > { %p1418_p9 = pneg %p1417_p7 }
  0x40   : > { %p1425_p2 = pnand %p1424_p1, %p1418_p9 }
  0x42   : > { %1428 = shalt.err (!%p1425_p2)
}
  0x43   : > { %1284 = dma.hbm_to_vmem [thread:$0]  (!%p1704_p11), %s2033_s4, 256, %s1708_s16, [#allocation11], %s1574_s19, %s1574_s19, %s1575_s20  }
  0x44   : > { %s1429_s26 = scalar_lea.hbm %s2037_s8, 256 }
  0x45   : > { %p1430_p6 = scmp.ne.s32.totalorder %s2037_s8, %s1429_s26  ;;  %p1436_p5 = scmp.lt.u32.totalorder %s1429_s26, %s2037_s8 }
  0x47   : > { %p1432_p10 = pnand %p1430_p6, %p1720_p13 }
  0x49   : > { %p1433_p3 = pneg %p1432_p10 }
  0x4b   : > { %p1438_p7 = pnand %p1436_p5, %p1433_p3 }
  0x4d   : > { %1441 = shalt.err (!%p1438_p7)
}
  0x4e   : > { %s1442_s13 = scalar_lea.vmem %s374_s18, 256  ;;  %p1450_p1 = scmp.lt.s32.totalorder %s374_s18, %s374_s18 }
  0x4f   : > { %p1443_p9 = scmp.ne.s32.totalorder %s374_s18, %s1442_s13  ;;  %p1451_p2 = scmp.lt.s32.totalorder %s1442_s13, %s1442_s13 }
  0x51   : > { %p1445_p12 = pnand %p1443_p9, %p1720_p13  ;;  %p1452_p4 = por %p1451_p2, %p1450_p1 }
  0x53   : > { %p1446_p0 = pneg %p1445_p12 }
  0x55   : > { %p1453_p8 = pnand %p1452_p4, %p1446_p0 }
  0x57   : > { %1456 = shalt.err (!%p1453_p8)
}
  0x58   : > { %1287 = dma.hbm_to_vmem [thread:$0]  (!%p1704_p11), %s2037_s8, 256, %s374_s18, [#allocation14], %s1574_s19, %s1574_s19, %s1575_s20  }
  0x59   : > { %s1793_s21 = sadd.s32 1, %s1565_s24   ;;  %s37_s10 = sadd.s32 1, %s1561_s23 }
  0x5a   : > { %s34_s14 = ssub.s32 %s1565_s24, %s1793_s21  ;;  %p44_p8 = scmp.ne.s32.totalorder %s1561_s23, %s1557_s22 }
  0x5b   : > { %p35_p4 = scmp.eq.s32.totalorder %s34_s14, 0  ;;  %p45_p13 = scmp.eq.s32.totalorder %s1565_s24, 0 }
  0x5c   : > { %p1299_p6 = scmp.lt.s32.totalorder %s1565_s24, 2  ;;  %p2059_p3 = scmp.eq.s32.totalorder %s1674_s25, 1 }
  0x5d   : > { %s1803_s11 = scalar_select %p35_p4, %s1561_s23, %s37_s10  }
  0x5e   : > { %p46_p10 = por %p45_p13, %p44_p8  ;;  %p1807_p5 = por %p2059_p3, %p44_p8 }
  0x5f   : > { %s396_s26 = sand.u32 1, %s1561_s23   ;;  %s1160_s30 = sshll.u32 %s1565_s24, 7 }
  0x60   : > { %s1159_s18 = sshll.u32 %s396_s26, 3  ;;  %s1816_s15 = scalar_lea.hbm %s2029_s0, %s1160_s30 }
  0x61   : > { %s400_s17 = scalar_lea.vmem [#allocation7], %s1159_s18  ;;  %p1818_p11 = pnand %p1299_p6, %p46_p10 }
  0x62   : > { %s407_s28 = sshll.u32 %s400_s17, 4  ;;  %s397_s16 = scalar_lea.sflag [#allocation8], %s396_s26  ;;  %s1822_s28 = int_to_ptr.vmem [resolvable:$true] %s407_s28 }
  0x63   : > { %s1457_s9 = scalar_lea.hbm %s1816_s15, 128  ;;  %p1459_p9 = pneg %p1818_p11 }
  0x64   : > { %p1458_p7 = scmp.ne.s32.totalorder %s1816_s15, %s1457_s9  ;;  %s1462_s30 = scalar_lea.hbm %s2029_s0, 256 }
  0x65   : > { %p1463_p1 = scmp.lt.u32.totalorder %s1816_s15, %s2029_s0  ;;  %p1464_p2 = scmp.lt.u32.totalorder %s1462_s30, %s1457_s9 }
  0x66   : > { %p1460_p12 = pnand %p1459_p9, %p1458_p7  ;;  %p1466_p8 = scmp.lt.u32.totalorder %s1457_s9, %s1816_s15 }
  0x67   : > { %p1465_p4 = por %p1464_p2, %p1463_p1 }
  0x68   : > { %p1461_p0 = pneg %p1460_p12 }
  0x69   : > { %p1467_p13 = por %p1466_p8, %p1465_p4 }
  0x6b   : > { %p1468_p6 = pnand %p1467_p13, %p1461_p0 }
  0x6d   : > { %1471 = shalt.err (!%p1468_p6)
}
  0x6e   : > { %s1472_s26 = scalar_lea.vmem %s1822_s28, 128  ;;  %s1576_s20 = smov [#allocation7]  }
  0x6f   : > { %p1473_p10 = scmp.ne.s32.totalorder %s1822_s28, %s1472_s26  ;;  %s1477_s17 = sshll.u32 %s1576_s20, 4  ;;  %s1478_s17 = int_to_ptr.vmem [resolvable:$false] %s1477_s17 }
  0x70   : > { %s1479_s14 = scalar_lea.vmem %s1478_s17, 256  ;;  %p1480_p12 = scmp.lt.s32.totalorder %s1822_s28, %s1478_s17 }
  0x71   : > { %p1475_p3 = pnand %p1473_p10, %p1459_p9  ;;  %p1481_p1 = scmp.lt.s32.totalorder %s1479_s14, %s1472_s26 }
  0x73   : > { %p1476_p7 = pneg %p1475_p3  ;;  %p1482_p2 = por %p1481_p1, %p1480_p12 }
  0x75   : > { %p1483_p4 = pnand %p1482_p2, %p1476_p7 }
  0x77   : > { %1486 = shalt.err (!%p1483_p4)
}
  0x78   : > { %1291 = dma.hbm_to_vmem [thread:$0]  (!%p1818_p11), %s1816_s15, 128, %s1822_s28, %s397_s16  }
  0x79   : > { %p2062_p0 = scmp.ne.s32.totalorder %s2056_s29, 0 }
  0x7a   : > { %s1852_s9 = sand.u32 (!%p2062_p0), 1, %s1557_s22   ;;  %p2063_p9 = scmp.ne.s32.totalorder (!%p2062_p0), %s2053_s27, 0 }
  0x7b   : > { %422 = sbr.rel (%p2062_p0) target bundleno = 1796 (0x704), region = 68  ;;  %s1162_s10 = sshll.u32 (!%p2062_p0), %s1852_s9, 3 }
  0x7c   : > { %s425_s30 = scalar_lea.sflag (!%p2062_p0), [#allocation8], %s1852_s9  ;;  %s1858_s18 = scalar_lea.vmem (!%p2062_p0), [#allocation7], %s1162_s10 }
  0x82   : > { %1536 = dma.done.wait (%p2063_p9), %s425_s30, 128  }
  0x83   : > { %1538 = vsyncadd (%p2063_p9), %s425_s30, 4294967168  ;;  %p2064_p11 = scmp.eq.s32.totalorder %s1674_s25, 0 }
  0x85   : > { %1540 = dma.done.wait (%p2064_p11), [#allocation11], 512   ;;  %p2065_p8 = pmov %p2064_p11 }
  0x87   : > { %1542 = vsyncadd (%p2065_p8), [#allocation11], 4294966784  ;;  %p2066_p13 = pmov %p2065_p8 }
  0x88   : > { %p2067_p6 = pmov %p2065_p8 }
  0x89   : > { %1544 = dma.done.wait (%p2066_p13), [#allocation14], 256  }
  0x8a   : > { %1546 = vsyncadd (%p2067_p6), [#allocation14], 4294967040  ;;  %p484_p10 = scmp.lt.s32.totalorder %s1674_s25, 1  ;;  %v1577_v0 = vmov 0.0   ;;  %vm1578_vm0 = vmmov 0   ;;  %vm512_vm1 = vcmask 261120  }
  0x8b   : > { %1218 = vmatprep.subr.bf16.mxu0 %v1577_v0  ;;  %1226 = vmatprep.subr.bf16.mxu1 %v1577_v0  ;;  %v1359_v2 = vld [vmem:[#allocation10] sm:$0xff]   ;;  %v1360_v3 = vld [vmem:[#allocation12] sm:$0xff]   ;;  %v1361_v6 = vld [vmem:[#allocation10 + $0x8] sm:$0xff]   ;;  %vm698_vm2 = vcmask 60416   ;;  %s1934_s13 = scalar_lea.vmem [#allocation15], %s1162_s10  ;;  %s1936_s16 = smov 0  }
  0x8c   : > { %s485_s27 = scalar_select %p484_p10, %s1674_s25, 1  ;;  %1222 = vmatprep.mubr.msk.bf16.mxu0 %vm1578_vm0, %v1577_v0  ;;  %1230 = vmatprep.mubr.msk.bf16.mxu1 %vm1578_vm0, %v1577_v0  ;;  %v517_v4 = vsel %vm512_vm1, %v1359_v2, 0  ;;  %v585_v5 = vsel %vm512_vm1, %v1360_v3, 0  ;;  %v1362_v7 = vld [vmem:[#allocation12 + $0x8] sm:$0xff]   ;;  %v520_v8 = vsel %vm512_vm1, %v1361_v6, 0  ;;  %v1363_v11 = vld [vmem:[%s2035_s6] sm:$0xff]  }
  0x8d   : > { %1219 = vmatpush3.bf16.xpose.msra.mxu0 %v517_v4  ;;  %1227 = vmatpush3.bf16.xpose.msra.mxu1 %v585_v5  ;;  %v588_v9 = vsel %vm512_vm1, %v1362_v7, 0  ;;  %v1892_v10 = vld [vmem:[%s1858_s18] sm:$0xff]  ;;  %v652_v13 = vsel %vm512_vm1, %v1363_v11, 0  ;;  %v1167_v16 = vld [vmem:[%s2032_s3] ss:$0 sm:$0xff]  ;;  %s1579_s18 = smov 120  }
  0x8e   : > { %s486_s28 = scalar_lea.vmem %s2030_s1, %s485_s27  ;;  %1220 = vmatprep.subr.bf16.mxu0 %v1577_v0  ;;  %1228 = vmatprep.subr.bf16.mxu1 %v1577_v0  ;;  %v489_v12 = vpack.c.bf16 %v1892_v10, %v1892_v10  ;;  %v1364_v14 = vld [vmem:[%s2035_s6 + $0x8] sm:$0xff]   ;;  %v1171_v17 = vld [vmem:[%s2034_s5] ss:$0 sm:$0xff]  ;;  %s1580_s27 = smov 112  }
  0x8f   : > { %v1883_v1 = vld [vmem:[%s486_s28] ss:$0 sm:$0xff]  ;;  %v655_v15 = vsel %vm512_vm1, %v1364_v14, 0  ;;  %s1581_s28 = smov 104  }
  0x90   : > { %v1175_v31 = vld [vmem:[%s2036_s7] ss:$0 sm:$0xff] }
  0x95   : > { %1221 = vmatpush3.bf16.xpose.msra.mxu0 %v520_v8  ;;  %1229 = vmatpush3.bf16.xpose.msra.mxu1 %v588_v9 }
  0x96   : > { %1234 = vmatprep.subr.bf16.mxu0 %v1577_v0 }
  0x9c   : > { %1223 = vmatmul.mubr.msk.bf16.vlgmr.msra.gmra.mrb[0].mxu0 %vm512_vm1, %v489_v12  ;;  %1231 = vmatmul.mubr.msk.bf16.vlgmr.msra.gmra.mrb[0].mxu1 %vm512_vm1, %v489_v12 }
  0x9d   : > { %1235 = vmatpush3.bf16.xpose.msra.mxu0 %v652_v13  ;;  %1238 = vmatprep.mubr.msk.bf16.mxu0 %vm1578_vm0, %v1577_v0 }
  0x9e   : > { %1236 = vmatprep.subr.bf16.mxu0 %v1577_v0 }
  0xa5   : > { %1237 = vmatpush3.bf16.xpose.msra.mxu0 %v655_v15 }
  0xac   : > { %1239 = vmatmul.mubr.msk.bf16.vlgmr.msra.gmra.mrb[4].mxu0 %vm512_vm1, %v489_v12 }
 0x16f   : > { %v556_v18 = vpop.f32.mrb[0].mxu0  ;;  %v624_v20 = vpop.f32.mrb[0].mxu1 }
 0x170   : > { %v557_v19 = vadd.f32 %v1167_v16, %v556_v18  ;;  %v1224_v21 = vpop.f32.mrb[1].mxu0  ;;  %v625_v22 = vadd.f32 %v1171_v17, %v624_v20  ;;  %v1232_v24 = vpop.f32.mrb[1].mxu1 }
 0x171   : > { %v559_v23 = vpop.f32.mrb[2].mxu0  ;;  %v627_v27 = vpop.f32.mrb[2].mxu1 }
 0x172   : > { %v562_v25 = vmul.f32 0.35355338, %v557_v19  ;;  %v1225_v26 = vpop.f32.mrb[3].mxu0  ;;  %v700_v28 = vpack.c.bf16 %v625_v22, %v625_v22  ;;  %v1233_v29 = vpop.f32.mrb[3].mxu1 }
 0x174   : > { %v697_v30 = vpack.c.bf16 %v562_v25, %v562_v25  ;;  %701 = vst.msk [vmem:[#allocation3] sm:$0xf] %vm698_vm2, %v700_v28  ;;  %715 = vrot.lane.b32.xlu0 %v700_v28, %s1579_s18 }
 0x176   : > { %699 = vst.msk [vmem:[#allocation2] sm:$0xf] %vm698_vm2, %v697_v30  ;;  %728 = vrot.lane.b32.xlu1 %v697_v30, %s1580_s27 }
 0x178   : > { %733 = vrot.lane.b32.xlu0 %v700_v28, %s1580_s27 }
 0x17c   : > { %707 = vrot.lane.b32.xlu0 %v697_v30, %s1579_s18 }
 0x17f   : > { %v691_v32 = vpop.f32.mrb[4].mxu0 }
 0x180   : > { %v692_v33 = vadd.f32 %v1175_v31, %v691_v32  ;;  %v1240_v34 = vpop.f32.mrb[5].mxu0  ;;  %743 = vrot.lane.b32.xlu0 %v697_v30, %s1581_s28 }
 0x181   : > { %v694_v35 = vpop.f32.mrb[6].mxu0 }
 0x182   : > { %v702_v36 = vpack.c.bf16 %v692_v33, %v692_v33  ;;  %v1241_v37 = vpop.f32.mrb[7].mxu0 }
 0x184   : > { %703 = vst.msk [vmem:[#allocation4] sm:$0xf] %vm698_vm2, %v702_v36  ;;  %723 = vrot.lane.b32.xlu1 %v702_v36, %s1579_s18  ;;  %753 = vrot.lane.b32.xlu0 %v702_v36, %s1581_s28 }
 0x188   : > { %738 = vrot.lane.b32.xlu1 %v702_v36, %s1580_s27 }
 0x18c   : > { %748 = vrot.lane.b32.xlu1 %v700_v28, %s1581_s28 }
 0x1e6   : > { %v716_v38 = vpop.permute.xlu0 %715 }
 0x1e7   : > { %719 = vst.msk [vmem:[#allocation3 + $0x4] sm:$0xf] %vm698_vm2, %v716_v38 }
 0x1e8   : > { %v729_v39 = vpop.permute.xlu1 %728 }
 0x1e9   : > { %732 = vst.msk [vmem:[#allocation2 + $0x8] sm:$0xf] %vm698_vm2, %v729_v39 }
 0x1ea   : > { %v734_v40 = vpop.permute.xlu0 %733 }
 0x1eb   : > { %737 = vst.msk [vmem:[#allocation3 + $0x8] sm:$0xf] %vm698_vm2, %v734_v40 }
 0x1ee   : > { %v708_v41 = vpop.permute.xlu0 %707 }
 0x1ef   : > { %711 = vst.msk [vmem:[#allocation2 + $0x4] sm:$0xf] %vm698_vm2, %v708_v41 }
 0x1f2   : > { %v744_v42 = vpop.permute.xlu0 %743 }
 0x1f3   : > { %747 = vst.msk [vmem:[#allocation2 + $0xc] sm:$0xf] %vm698_vm2, %v744_v42 }
 0x1f6   : > { %v724_v43 = vpop.permute.xlu1 %723  ;;  %v754_v44 = vpop.permute.xlu0 %753 }
 0x1f7   : > { %727 = vst.msk [vmem:[#allocation4 + $0x4] sm:$0xf] %vm698_vm2, %v724_v43  ;;  %757 = vst.msk [vmem:[#allocation4 + $0xc] sm:$0xf] %vm698_vm2, %v754_v44 }
 0x1fa   : > { %v739_v45 = vpop.permute.xlu1 %738 }
 0x1fb   : > { %742 = vst.msk [vmem:[#allocation4 + $0x8] sm:$0xf] %vm698_vm2, %v739_v45 }
 0x1fe   : > { %v749_v46 = vpop.permute.xlu1 %748 }
 0x1ff   : > { %752 = vst.msk [vmem:[#allocation3 + $0xc] sm:$0xf] %vm698_vm2, %v749_v46 }
 0x200 LB: >> { %v1582_v47 = vmov 0.0   ;;  %vm1583_vm3 = vmmov 0   ;;  %s1942_s19 = sshll.u32 %s1569_s16, 2  ;;  %vm779_vm4 = vcmask 64512   ;;  %vm839_vm5 = vcmask 1043456   ;;  %s763_s16 = sadd.s32 1, %s1569_s16   ;;  %s1569_s16 = sphi %s1936_s16, %s763_s16  }
 0x201   : >> { %1242 = vmatprep.subr.bf16.mxu0 %v1582_v47  ;;  %1244 = vmatprep.mubr.msk.bf16.mxu0 %vm1583_vm3, %v1582_v47  ;;  %s768_s10 = scalar_lea.vmem [#allocation3], %s1942_s19  ;;  %s765_s26 = scalar_lea.vmem [#allocation2], %s1942_s19 }
 0x202   : >> { %1248 = vmatprep.subr.bf16.mxu1 %v1582_v47  ;;  %1250 = vmatprep.mubr.msk.bf16.mxu1 %vm1583_vm3, %v1582_v47  ;;  %v766_v50 = vld [vmem:[%s765_s26] sm:$0xf]  ;;  %s771_s20 = scalar_lea.vmem [#allocation4], %s1942_s19  ;;  %s887_s17 = scalar_lea.vmem [#allocation5], %s1942_s19 }
 0x203   : >> { %v772_v57 = vld [vmem:[%s771_s20] sm:$0xf]  ;;  %p760_p3 = scmp.ge.s32.totalorder %s763_s16, 4  }
 0x204   : >> { %v841_v58 = vsel %vm839_vm5, %v772_v57, 0  ;;  %s1584_s14 = smov (%p760_p3), 8   ;;  %v1369_v15 = vld [vmem:[#allocation13] sm:$0xff] (%p760_p3)   ;;  %s1585_s30 = smov (%p760_p3), 24   ;;  %vm897_vm6 = vcmask (%p760_p3), 126016   ;;  %vm905_vm7 = vcmask (%p760_p3), 191616  }
 0x205   : >> { %1249 = vmatpush3.bf16.msra.mxu1 %v841_v58  ;;  %v941_v17 = vsel (%p760_p3), %vm512_vm1, %v1369_v15, 0  ;;  %s1586_s18 = smov (%p760_p3), 16   ;;  %vm913_vm8 = vcmask (%p760_p3), 257216   ;;  %s2068_s15 = sld [smem:[#allocation22_spill]] (%p760_p3) }
 0x206   : >> { %v769_v48 = vld [vmem:[%s768_s10] sm:$0xf]  ;;  %s2069_s19 = sld [smem:[#allocation23_spill]] (%p760_p3)  ;;  %s2070_s20 = sld [smem:[#allocation24_spill]] (%p760_p3) }
 0x207   : >> { %v784_v49 = vsel %vm779_vm4, %v769_v48, 0  ;;  %s2071_s27 = sld [smem:[#allocation25_spill]] (%p760_p3) }
 0x208   : >> { %1243 = vmatpush3.bf16.xpose.msra.mxu0 %v784_v49 }
 0x209   : > { %1254 = vmatprep.subr.bf16.mxu0 (%p760_p3), %v1577_v0 }
 0x20c   : > { %v1193_v38 = vld [vmem:[%s2069_s19] ss:$0 sm:$0xff] (%p760_p3) }
 0x20d   : > { %v1194_v40 = vld [vmem:[%s2070_s20] ss:$0 sm:$0xff] (%p760_p3) }
 0x20f   : >> { %1245 = vmatmul.mubr.msk.bf16.vlgmr.msra.gmra.mrb[0].mxu0 %vm779_vm4, %v766_v50 }
 0x210   : > { %1258 = vmatprep.mubr.msk.bf16.mxu0 (%p760_p3), %vm1578_vm0, %v1577_v0  ;;  %1255 = vmatpush3.bf16.xpose.msra.mxu0 (%p760_p3), %v941_v17 }
 0x211   : > { %1256 = vmatprep.subr.bf16.mxu0 (%p760_p3), %v1577_v0  ;;  %v1189_v0 = vld [vmem:[%s2068_s15] ss:$0 sm:$0xff] (%p760_p3)  ;;  %s1019_s15 = scalar_lea.sflag (%p760_p3), [#allocation9], %s1852_s9 }
 0x2e2   : >> { %v820_v51 = vpop.f32.mrb[0].mxu0 }
 0x2e3   : >> { %v821_v52 = vadd.f32 %v1883_v1, %v820_v51  ;;  %v1246_v53 = vpop.f32.mrb[1].mxu0  ;;  %v1370_v1 = vld [vmem:[#allocation13 + $0x8] sm:$0xff] (%p760_p3)  }
 0x2e4   : >> { %v823_v54 = vpop.f32.mrb[2].mxu0  ;;  %v944_v18 = vsel (%p760_p3), %vm512_vm1, %v1370_v1, 0 }
 0x2e5   : >> { %v1247_v55 = vpop.f32.mrb[3].mxu0  ;;  %v826_v56 = vsel %vm779_vm4, %v821_v52, -inf  ;;  %1257 = vmatpush3.bf16.xpose.msra.mxu0 (%p760_p3), %v944_v18 }
 0x2e6   : >> { %827 = vmax.xlane.f32.xlu0 %v826_v56 }
 0x373   : >> { %v828_v59 = vpop.xlane.xlu0 %827 }
 0x374   : >> { %v829_v60 = vsub.f32 %v821_v52, %v828_v59 }
 0x376   : >> { %v830_v61 = vmul.f32 1.442695, %v829_v60 }
 0x378   : >> { %1365 = vpow2.f32 %v830_v61 }
 0x382   : >> { %v1366_v62 = vpop.eup %1365 }
 0x383   : >> { %v832_v63 = vsel %vm779_vm4, %v1366_v62, 0.0  ;;  %v835_v2 = vpack.c.bf16 %v1366_v62, %v1366_v62 }
 0x384   : >> { %833 = vadd.xlane.f32.xlu0 %v832_v63 }
 0x385   : >> { %1251 = vmatmul.mubr.msk.bf16.vlgmr.msra.gmra.mrb[0].mxu1 %vm779_vm4, %v835_v2 }
 0x411   : >> { %v834_v3 = vpop.xlane.xlu0 %833 }
 0x412   : >> { %1367 = vrcp.f32 %v834_v3 }
 0x41c   : >> { %v1368_v4 = vpop.eup %1367 }
 0x457   : > { %762 = sbr.rel (!%p760_p3) target bundleno = 512 (0x200), region = 151 }
 0x458   : >> { %v877_v5 = vpop.f32.mrb[0].mxu1 }
 0x459   : >> { %v884_v6 = vmul.f32 %v1368_v4, %v877_v5  ;;  %v1252_v7 = vpop.f32.mrb[1].mxu1 }
 0x45a   : >> { %v880_v8 = vpop.f32.mrb[2].mxu1 }
 0x45b   : >> { %v885_v9 = vpack.c.bf16 %v884_v6, %v884_v6  ;;  %v1253_v11 = vpop.f32.mrb[3].mxu1 }
 0x45d   : >> { %888 = vst.msk [vmem:[%s887_s17] sm:$0xf] %vm698_vm2, %v885_v9  ;;  %s1196_s17 = sshll.u32 (%p760_p3), %s1674_s25, 7  ;;  %s1587_s25 = smov (%p760_p3), [#allocation15]  }
 0x45e   : > { %s1983_s29 = scalar_lea.hbm %s2071_s27, %s1196_s17  ;;  %s1491_s16 = sshll.u32 %s1587_s25, 4  ;;  %s1492_s16 = int_to_ptr.vmem [resolvable:$false] %s1491_s16 }
 0x45f   : > { %s1493_s19 = scalar_lea.vmem %s1492_s16, 256 }
 0x464   : > { %v892_v12 = vld [vmem:[#allocation5 + $0x4] sm:$0xf]  ;;  %v900_v13 = vld [vmem:[#allocation5 + $0x8] sm:$0xf]  ;;  %v908_v14 = vld [vmem:[#allocation5 + $0xc] sm:$0xf] }
 0x465   : > { %894 = vrot.lane.b32.xlu0 %v892_v12, %s1584_s14  ;;  %910 = vrot.lane.b32.xlu1 %v908_v14, %s1585_s30  ;;  %v889_v16 = vld [vmem:[#allocation5] sm:$0xf]  ;;  %s1032_s14 = sshll.u32 %s1934_s13, 4  ;;  %s1985_s14 = int_to_ptr.vmem [resolvable:$true] %s1032_s14 }
 0x466   : > { %890 = vst.msk [vmem:[#allocation6] sm:$0xf] %vm698_vm2, %v889_v16  ;;  %s1487_s28 = scalar_lea.vmem %s1985_s14, 128  ;;  %p1494_p2 = scmp.lt.s32.totalorder %s1985_s14, %s1492_s16 }
 0x467   : > { %p1488_p7 = scmp.ne.s32.totalorder %s1985_s14, %s1487_s28  ;;  %p1495_p4 = scmp.lt.s32.totalorder %s1493_s19, %s1487_s28 }
 0x469   : > { %902 = vrot.lane.b32.xlu0 %v900_v13, %s1586_s18  ;;  %p1489_p12 = pnand %p1488_p7, %p1807_p5  ;;  %p1496_p0 = por %p1495_p4, %p1494_p2 }
 0x46b   : > { %p1490_p1 = pneg %p1489_p12 }
 0x46d   : > { %p1497_p9 = pnand %p1496_p0, %p1490_p1 }
 0x4d7   : > { %v895_v19 = vpop.permute.xlu0 %894  ;;  %v911_v20 = vpop.permute.xlu1 %910 }
 0x4d8   : > { %898 = vst.msk [vmem:[#allocation6] sm:$0xf] %vm897_vm6, %v895_v19 }
 0x4db   : > { %v903_v21 = vpop.permute.xlu0 %902 }
 0x4dc   : > { %906 = vst.msk [vmem:[#allocation6] sm:$0xf] %vm905_vm7, %v903_v21 }
 0x4dd   : > { %914 = vst.msk [vmem:[#allocation6] sm:$0xf] %vm913_vm8, %v911_v20 }
 0x4e4   : > { %v915_v22 = vld [vmem:[#allocation6] sm:$0xf] }
 0x4e5   : > { %1259 = vmatmul.mubr.msk.bf16.vlgmr.msra.gmra.mrb[0].mxu0 %vm512_vm1, %v915_v22 }
 0x5b8   : > { %v980_v23 = vpop.f32.mrb[0].mxu0 }
 0x5b9   : > { %v981_v24 = vadd.f32 %v1189_v0, %v980_v23  ;;  %v1260_v25 = vpop.f32.mrb[1].mxu0 }
 0x5ba   : > { %v983_v26 = vpop.f32.mrb[2].mxu0 }
 0x5bb   : > { %v986_v27 = vadd.f32 %v981_v24, %v1892_v10  ;;  %v1261_v28 = vpop.f32.mrb[3].mxu0 }
 0x5bd   : > { %v987_v29 = vsel %vm512_vm1, %v986_v27, 0.0 }
 0x5be   : > { %988 = vadd.xlane.f32.xlu1 %v987_v29 }
 0x64b   : > { %v989_v30 = vpop.xlane.xlu1 %988 }
 0x64c   : > { %v991_v31 = vmul.f32 0.03125, %v989_v30 }
 0x64e   : > { %v992_v32 = vsub.f32 %v986_v27, %v991_v31 }
 0x650   : > { %v993_v33 = vmul.f32 %v992_v32, %v992_v32 }
 0x652   : > { %v994_v34 = vsel %vm512_vm1, %v993_v33, 0.0 }
 0x653   : > { %995 = vadd.xlane.f32.xlu0 %v994_v34 }
 0x6e0   : > { %v996_v35 = vpop.xlane.xlu0 %995 }
 0x6e1   : > { %v997_v36 = vmul.f32 0.03125, %v996_v35 }
 0x6e3   : > { %v998_v37 = vadd.f32 1e-12, %v997_v36 }
 0x6e5   : > { %1371 = vrsqrt.f32 %v998_v37 }
 0x6ef   : > { %v1372_v10 = vpop.eup %1371 }
 0x6f0   : > { %v1000_v39 = vmul.f32 %v1372_v10, %v992_v32 }
 0x6f2   : > { %v1008_v41 = vmul.f32 %v1193_v38, %v1000_v39 }
 0x6f4   : > { %v1016_v42 = vadd.f32 %v1194_v40, %v1008_v41 }
 0x6f6   : > { %1017 = vst.msk [vmem:[%s1934_s13] sm:$0xff] %vm512_vm1, %v1016_v42 }
 0x6f7   : > { %1500 = shalt.err (!%p1497_p9)
}
 0x6f8   : > { %s1501_s9 = scalar_lea.hbm %s1983_s29, 128  ;;  %s1505_s26 = scalar_lea.hbm %s2071_s27, 256 }
 0x6f9   : > { %p1502_p11 = scmp.ne.s32.totalorder %s1983_s29, %s1501_s9  ;;  %p1506_p6 = scmp.lt.u32.totalorder %s1983_s29, %s2071_s27 }
 0x6fa   : > { %p1507_p10 = scmp.lt.u32.totalorder %s1505_s26, %s1501_s9  ;;  %p1509_p7 = scmp.lt.u32.totalorder %s1501_s9, %s1983_s29 }
 0x6fb   : > { %p1503_p8 = pnand %p1502_p11, %p1807_p5 }
 0x6fc   : > { %p1508_p3 = por %p1507_p10, %p1506_p6 }
 0x6fd   : > { %p1504_p13 = pneg %p1503_p8 }
 0x6fe   : > { %p1510_p12 = por %p1509_p7, %p1508_p3 }
 0x700   : > { %p1511_p1 = pnand %p1510_p12, %p1504_p13 }
 0x702   : > { %1514 = shalt.err (!%p1511_p1)
}
 0x703   : > { %1276 = dma.vmem_to_hbm [thread:$0]  (%p1807_p5), %s1985_s14, 128, %s1983_s29, %s1019_s15  }
 0x704 PF: > { %s2072_s30 = sld [smem:[#allocation20_spill]]  ;;  %s2073_s18 = sld [smem:[#allocation21_spill]] }
 0x705   : > { %p2075_p4 = scmp.ge.s32.totalorder %s1565_s24, 2 }
 0x70a   : > { %s1044_s28 = sand.u32 1, %s2072_s30   ;;  %p2074_p2 = scmp.ne.s32.totalorder %s2073_s18, 0 }
 0x70b   : > { %s1045_s25 = scalar_lea.sflag [#allocation9], %s1044_s28 }
 0x70c   : > { %p1293_p0 = pnand %p2075_p4, %p2074_p2 }
 0x70e   : > { %1548 = dma.done.wait (!%p1293_p0), %s1045_s25, 128  }
 0x70f   : > { %1550 = vsyncadd (!%p1293_p0), %s1045_s25, 4294967168  ;;  %s2076_s16 = smov %s1793_s21  ;;  %p27_p9 = scmp.ge.s32.totalorder %s1793_s21, 4  }
 0x710   : > { %s2077_s21 = smov %s1557_s22  ;;  %s2078_s22 = smov %s1561_s23 }
 0x711   : > { %s2079_s23 = smov %s1803_s11  ;;  %s2080_s24 = smov %s2076_s16 }
 0x712   :  { %29 = sbr.rel (!%p27_p9) target bundleno = 12 (0xc), region = 162 }
 0x719   :  { %1050 = vsyncpa [#allocation8], 1 }
 0x71a   :  { %1052 = vsyncpa [#allocation8 + $0x1], 1 }
 0x71b   :  { %1053 = vsyncpa [#allocation11], 1 }
 0x71c   :  { %1054 = vsyncpa [#allocation14], 1 }
 0x71d   :  { %1055 = vsyncpa [#allocation9], 1 }
 0x71e   :  { %1057 = vsyncpa [#allocation9 + $0x1], 1 }

</bundles_post_ra>
